<compile_context>
chip_gen: v6e
topology: v6e:2x2x1
jax: 0.10.0
libtpu: 0.0.40
codegen_flags: <defaults>
</compile_context>

<pallas_src>
import jax
import jax.numpy as jnp
from jax.experimental import pallas as pl
from jax.experimental.pallas import tpu as pltpu

K = 4        # in_features of Linear(4, 1, bias=False)
SUB = 8      # sublane rows per feature plane (f32 vreg height)
LANE = 128   # lane width


def _cdiv(a: int, b: int) -> int:
    return -(-a // b)


def _round_up(a: int, m: int) -> int:
    return _cdiv(a, m) * m


def _critic_kernel(w_ref, x_ref, o_ref):
    """w_ref: (K,) f32 in SMEM (scalar prefetch).
    x_ref:  (K*SUB, tb) block; rows [k*SUB, (k+1)*SUB) hold feature k for
            SUB*tb batch rows -> every slice below is whole, dense vregs.
    o_ref:  (SUB, tb) block; flat layout == batch order.
    """
    acc = x_ref[0:SUB, :].astype(jnp.float32) * w_ref[0]
    for k in range(1, K):
        acc = acc + x_ref[k * SUB:(k + 1) * SUB, :].astype(jnp.float32) * w_ref[k]
    o_ref[...] = acc.astype(o_ref.dtype)


def critic_forward(x, w, *, tile_rows: int = 262_144):
    """x: (..., 4) float; w: (1, 4) (PyTorch nn.Linear weight). Returns (..., 1)."""
    *lead, k_in = x.shape
    assert k_in == K, f"expected last dim {K}, got {k_in}"
    assert w.shape == (1, K), f"expected weight shape (1, {K}), got {w.shape}"

    out_shape = tuple(lead) + (1,)
    B = 1
    for d in lead:
        B *= d
    if B == 0:                                   # empty-batch edge case
        return jnp.zeros(out_shape, x.dtype)

    x2 = x.reshape(B, K)                         # metadata-only for contiguous x
    w_flat = w.reshape(K).astype(jnp.float32)    # 4 scalars -> SMEM prefetch

    # ---- tile-count-first tiling: bound padding, keep ~4 MiB f32 blocks ----
    nt = max(1, _cdiv(B, tile_rows))
    if nt > 1 and nt % 2 == 1:
        nt += 1                                  # even tile count -> v7x megacore balance
    tb = _round_up(_cdiv(B, nt * SUB), LANE)     # lanes per grid step
    Bp = nt * SUB * tb                           # padded batch (multiple of 1024)

    # One fused HBM pass in the INPUT dtype: transpose (+ zero-pad tail).
    xt = x2.T                                    # (K, B)
    if Bp != B:
        xt = jnp.pad(xt, ((0, 0), (0, Bp - B)))
    # Free reshape: row 8*k + s of x32 = feature k of batch rows
    # [s*Bp/8, (s+1)*Bp/8); kernel vregs are fully lane/sublane dense.
    x32 = xt.reshape(K * SUB, Bp // SUB)

    itemsize = jnp.dtype(x.dtype).itemsize

    out = pl.pallas_call(
        _critic_kernel,
        out_shape=jax.ShapeDtypeStruct((SUB, Bp // SUB), x.dtype),
        grid_spec=pltpu.PrefetchScalarGridSpec(
            num_scalar_prefetch=1,               # -> w_flat lands in SMEM
            grid=(nt,),
            in_specs=[
                # (32, tb): sublane dim multiple of 8, lane dim multiple of 128.
                # NOTE: add pipeline_mode=pl.Buffered(3) here if profiles still
                # show exposed DMA at startup (VMEM headroom allows it).
                pl.BlockSpec((K * SUB, tb), lambda i, w_s: (0, i)),
            ],
            out_specs=pl.BlockSpec((SUB, tb), lambda i, w_s: (0, i)),
        ),
        compiler_params=pltpu.CompilerParams(
            # Independent batch tiles -> shard across TensorCores on v7x.
            dimension_semantics=("parallel",),
        ),
        cost_estimate=pl.CostEstimate(
            flops=2 * Bp * K,
            transcendentals=0,
            bytes_accessed=Bp * K * itemsize + Bp * itemsize + K * 4,
        ),
    )(w_flat, x32)

    # (SUB, Bp/8) flat layout is exactly batch order: metadata reshape, then a
    # (tiny) tail slice only when padding was added.
    return out.reshape(Bp)[:B].reshape(out_shape)


if __name__ == "__main__":
    key = jax.random.PRNGKey(0)
    k_x, k_w = jax.random.split(key)

    B, IN, OUT = 2, 4, 1

    # Deterministic synthetic parameters; weight kept in the PyTorch
    # nn.Linear layout (out_features, in_features) = (1, 4).
    w = jax.random.uniform(
        k_w, (OUT, IN), dtype=jnp.float32, minval=-0.5, maxval=0.5
    )
    x = jax.random.normal(k_x, (B, IN), dtype=jnp.float32)

    out = critic_forward(x, w)
    out = jax.block_until_ready(out)

    # Reference check against plain JAX (same math as the PyTorch forward).
    ref = x @ w.T
    assert out.shape == (B, OUT)
    assert jnp.allclose(out, ref, atol=1e-5, rtol=1e-5)

    print("KERNEL_OK")
</pallas_src>

<mosaic_0001>
module attributes {stable_mosaic.version = 11 : i64} {
  func.func @_critic_kernel(%arg0: i32, %arg1: memref<4xf32, #tpu.memory_space<smem>>, %arg2: memref<32x128xf32, #tpu.memory_space<vmem>>, %arg3: memref<8x128xf32, #tpu.memory_space<vmem>>) attributes {dimension_semantics = [#tpu.dimension_semantics<parallel>], iteration_bounds = array<i64: 1>, scalar_prefetch = 1 : i64, scratch_operands = 0 : i64, tpu.core_type = #tpu.core_type<tc>, window_params = [{transform_indices = @transform_0, window_bounds = array<i64: 32, 128>}, {transform_indices = @transform_1, window_bounds = array<i64: 8, 128>}]} {
    %c0 = arith.constant 0 : index
    %c0_0 = arith.constant 0 : index
    %0 = vector.load %arg2[%c0, %c0_0] : memref<32x128xf32, #tpu.memory_space<vmem>>, vector<8x128xf32>
    %c0_1 = arith.constant 0 : index
    %1 = memref.load %arg1[%c0_1] : memref<4xf32, #tpu.memory_space<smem>>
    %2 = vector.broadcast %1 : f32 to vector<8x128xf32>
    %3 = arith.mulf %0, %2 : vector<8x128xf32>
    %c8 = arith.constant 8 : index
    %c0_2 = arith.constant 0 : index
    %4 = vector.load %arg2[%c8, %c0_2] : memref<32x128xf32, #tpu.memory_space<vmem>>, vector<8x128xf32>
    %c1 = arith.constant 1 : index
    %5 = memref.load %arg1[%c1] : memref<4xf32, #tpu.memory_space<smem>>
    %6 = vector.broadcast %5 : f32 to vector<8x128xf32>
    %7 = arith.mulf %4, %6 : vector<8x128xf32>
    %8 = arith.addf %3, %7 : vector<8x128xf32>
    %c16 = arith.constant 16 : index
    %c0_3 = arith.constant 0 : index
    %9 = vector.load %arg2[%c16, %c0_3] : memref<32x128xf32, #tpu.memory_space<vmem>>, vector<8x128xf32>
    %c2 = arith.constant 2 : index
    %10 = memref.load %arg1[%c2] : memref<4xf32, #tpu.memory_space<smem>>
    %11 = vector.broadcast %10 : f32 to vector<8x128xf32>
    %12 = arith.mulf %9, %11 : vector<8x128xf32>
    %13 = arith.addf %8, %12 : vector<8x128xf32>
    %c24 = arith.constant 24 : index
    %c0_4 = arith.constant 0 : index
    %14 = vector.load %arg2[%c24, %c0_4] : memref<32x128xf32, #tpu.memory_space<vmem>>, vector<8x128xf32>
    %c3 = arith.constant 3 : index
    %15 = memref.load %arg1[%c3] : memref<4xf32, #tpu.memory_space<smem>>
    %16 = vector.broadcast %15 : f32 to vector<8x128xf32>
    %17 = arith.mulf %14, %16 : vector<8x128xf32>
    %18 = arith.addf %13, %17 : vector<8x128xf32>
    %c0_5 = arith.constant 0 : index
    %c0_6 = arith.constant 0 : index
    %19 = vector.load %arg3[%c0_5, %c0_6] : memref<8x128xf32, #tpu.memory_space<vmem>>, vector<8x128xf32>
    tpu.vector_store %arg3[%c0_5, %c0_6], %18 {strides = array<i32>} : memref<8x128xf32, #tpu.memory_space<vmem>>, vector<8x128xf32>,
    return
  }
  func.func @transform_0(%arg0: i32, %arg1: memref<4xf32, #tpu.memory_space<smem>>) -> (i32, i32) {
    %c0_i32 = arith.constant 0 : i32
    %c0_i32_0 = arith.constant 0 : i32
    return %c0_i32, %arg0 : i32, i32
  }
  func.func @transform_1(%arg0: i32, %arg1: memref<4xf32, #tpu.memory_space<smem>>) -> (i32, i32) {
    %c0_i32 = arith.constant 0 : i32
    %c0_i32_0 = arith.constant 0 : i32
    return %c0_i32, %arg0 : i32, i32
  }
}

</mosaic_0001>

<bundles_post_ra>
// kernel: tpu_custom_call.1
= control target key start
LH: loop header
LB: loop body
LE: loop exit
PB: predicated region body
PF: predicated region fallthrough
CT: control target
= control target key end

     0   :  { %s125_s9 = smov [#allocation3]   ;;  %s154_s0 = inlined_call_operand.hbm [shape: f32[4], index: 0, kind: input, shape index: {}]   ;;  %s155_s1 = inlined_call_operand.hbm [shape: f32[32,128], index: 1, kind: input, shape index: {}]   ;;  %s156_s2 = inlined_call_operand.hbm [shape: f32[8,128], index: 2, kind: output, shape index: {}]  }
   0x1   :  { %8 = dma.hbm_to_smem %s154_s0, 16, %s125_s9, [#allocation2] }
   0x2   :  { %119 = dma.done.wait [#allocation2], 16 }
   0x3   :  { %120 = vsyncadd [#allocation2], 4294967280 }
   0x4   :  { %10 = sfence }
   0x5   :  { %11 = vsyncpa [#allocation5], 0 }
   0x6   :  { %12 = vsyncpa [#allocation6], 0  ;;  %s126_s12 = smov [#allocation4]  }
   0x7   :  { %s18_s13 = sshll.u32 %s126_s12, 4  ;;  %s19_s13 = int_to_ptr.vmem [resolvable:$true] %s18_s13 }
   0x8   :  { %s87_s14 = scalar_lea.vmem %s19_s13, 512  ;;  %p92_p1 = scmp.lt.s32.totalorder %s19_s13, %s19_s13 }
   0x9   :  { %p88_p0 = scmp.ne.s32.totalorder %s19_s13, %s87_s14  ;;  %p93_p2 = scmp.lt.s32.totalorder %s87_s14, %s87_s14 }
   0xb   :  { %p94_p3 = por %p93_p2, %p92_p1 }
   0xd   :  { %p95_p4 = pnand %p94_p3, %p88_p0 }
   0xf   :  { %98 = shalt.err (!%p95_p4)
}
  0x10   :  { %s127_s15 = smov 128   ;;  %s128_s16 = smov 8  }
  0x11   :  { %24 = dma.hbm_to_vmem [thread:$0]  %s155_s1, 512, %s19_s13, [#allocation5], %s127_s15, %s127_s15, %s128_s16  }
  0x12   :  { %121 = dma.done.wait [#allocation5], 512  }
  0x13   :  { %122 = vsyncadd [#allocation5], 4294966784  ;;  %s29_s0 = sld [smem:[#allocation3]]  ;;  %v28_v0 = vld [vmem:[#allocation4] sm:$0xff]  ;;  %v32_v2 = vld [vmem:[#allocation4 + $0x8] sm:$0xff]  ;;  %s129_s1 = smov [#allocation7]  }
  0x14   :  { %s63_s19 = sld [smem:[#allocation3 + $0x1]]  ;;  %v37_v3 = vld [vmem:[#allocation4 + $0x10] sm:$0xff]  ;;  %v42_v6 = vld [vmem:[#allocation4 + $0x18] sm:$0xff]  ;;  %s54_s22 = sshll.u32 %s129_s1, 4  ;;  %s55_s22 = int_to_ptr.vmem [resolvable:$true] %s54_s22 }
  0x15   :  { %s64_s20 = sld [smem:[#allocation3 + $0x2]]  ;;  %s99_s23 = scalar_lea.vmem %s55_s22, 128 }
  0x16   :  { %s65_s21 = sld [smem:[#allocation3 + $0x3]]  ;;  %p100_p5 = scmp.ne.s32.totalorder %s55_s22, %s99_s23 }
  0x17   :  { %p104_p6 = scmp.lt.s32.totalorder %s55_s22, %s55_s22  ;;  %p105_p7 = scmp.lt.s32.totalorder %s99_s23, %s99_s23 }
  0x19   :  { %v30_v1 = vstv %s29_s0  ;;  %p106_p8 = por %p105_p7, %p104_p6 }
  0x1a   :  { %v31_v4 = vmul.f32 %v30_v1, %v28_v0  ;;  %v34_v5 = vstv %s63_s19 }
  0x1b   :  { %v35_v7 = vmul.f32 %v34_v5, %v32_v2  ;;  %v39_v8 = vstv %s64_s20  ;;  %p107_p9 = pnand %p106_p8, %p100_p5 }
  0x1c   :  { %v40_v9 = vmul.f32 %v39_v8, %v37_v3  ;;  %v44_v10 = vstv %s65_s21 }
  0x1d   :  { %v36_v11 = vadd.f32 %v35_v7, %v31_v4  ;;  %v45_v12 = vmul.f32 %v44_v10, %v42_v6 }
  0x1f   :  { %v41_v13 = vadd.f32 %v40_v9, %v36_v11 }
  0x21   :  { %v46_v14 = vadd.f32 %v45_v12, %v41_v13 }
  0x23   :  { %47 = vst [vmem:[#allocation7] sm:$0xff] %v46_v14 }
  0x24   :  { %110 = shalt.err (!%p107_p9)
}
  0x25   :  { %57 = dma.vmem_to_hbm [thread:$0]  %s55_s22, 128, %s156_s2, [#allocation6]  }
  0x26   :  { %123 = dma.done.wait [#allocation6], 128  }
  0x27   :  { %124 = vsyncadd [#allocation6], 4294967168 }
  0x28   :  { %61 = vsyncpa [#allocation5], 1 }
  0x29   :  { %62 = vsyncpa [#allocation6], 1 }

</bundles_post_ra>
